<compile_context>
chip_gen: v7x
topology: tpu7x:2x2x1
jax: 0.10.0
libtpu: 0.0.40
codegen_flags: <defaults>
</compile_context>

<pallas_src>
import functools

import jax
import jax.numpy as jnp
from jax.experimental import pallas as pl
from jax.experimental.pallas import tpu as pltpu


def _round_up(x, m):
    return ((x + m - 1) // m) * m


def _vmem_limit_bytes():
    """Scoped-VMEM limit sized per generation (v7x has only 64 MiB physical)."""
    try:
        phys = pltpu.get_tpu_info().vmem_capacity_bytes
    except Exception:
        phys = 64 << 20  # conservative fallback: v7x per-TensorCore VMEM
    return int(min(phys * 3 // 4, 96 << 20))


def _choose_tile_n(n, c, itemsize, vmem_limit):
    """Largest row tile whose double-buffered input + f32 temporaries fit VMEM."""
    sublane = 8 if itemsize >= 4 else (32 // itemsize)       # 8 for f32, 16 for bf16
    # Per row: 2x (double-buffered) input block + ~6 f32 (tile_n, C) temporaries.
    per_row = c * (2 * itemsize + 6 * 4) + 64
    tile = (vmem_limit // 2) // per_row
    tile = max(sublane, min(1024, (tile // sublane) * sublane))
    tile = min(tile, _round_up(n, sublane))                  # no bigger than padded N
    return int(tile)


def _label_smoothing_kernel(pred_ref, tgt_ref, out_ref, *,
                            classes, smoothing, n_valid, tile_n, need_mask):
    """One (tile_n, C) block of logits -> (tile_n, 1) per-row smoothed losses."""
    confidence = 1.0 - smoothing
    off = smoothing / (classes - 1)

    x = pred_ref[...].astype(jnp.float32)                        # (tn, C)
    tgt = tgt_ref[...]                                           # (tn, 1) int32

    # Numerically-stable log-softmax pieces.
    m = jnp.max(x, axis=-1, keepdims=True)                       # (tn, 1)
    z = x - m                                                    # (tn, C)
    lse = jnp.log(jnp.sum(jnp.exp(z), axis=-1, keepdims=True))   # (tn, 1)

    sum_z = jnp.sum(z, axis=-1, keepdims=True)                   # (tn, 1)
    col = jax.lax.broadcasted_iota(jnp.int32, z.shape, 1)        # (tn, C)
    z_t = jnp.sum(jnp.where(col == tgt, z, 0.0),
                  axis=-1, keepdims=True)                        # (tn, 1) = z[target]

    # sum_c(-true_dist * logp) = -off*(sum_c z - C*lse) - (conf-off)*(z_t - lse)
    row_loss = (-off) * (sum_z - classes * lse) \
               - (confidence - off) * (z_t - lse)                # (tn, 1)

    if need_mask:  # static flag: only emitted when N was padded
        row = (jax.lax.broadcasted_iota(jnp.int32, row_loss.shape, 0)
               + pl.program_id(0) * tile_n)
        row_loss = jnp.where(row < n_valid, row_loss, 0.0)

    out_ref[...] = row_loss


def label_smoothing_loss(pred, target, *, classes, smoothing=0.0, tile_n=None):
    """Pallas TPU implementation of LabelSmoothingLoss.forward.

    pred:   (N, C) float logits (f32 or bf16; kept in its dtype in HBM)
    target: (N,)   integer class ids
    returns scalar float32 = mean over N of sum_c(-true_dist * log_softmax(pred))
    """
    N, C = pred.shape
    assert C == classes
    assert classes > 1, "smoothing/(classes-1) requires classes > 1"

    itemsize = jnp.dtype(pred.dtype).itemsize
    vmem_limit = _vmem_limit_bytes()
    if tile_n is None:
        tile_n = _choose_tile_n(N, C, itemsize, vmem_limit)

    n_pad = pl.cdiv(N, tile_n) * tile_n
    num_tiles = n_pad // tile_n
    need_mask = n_pad != N

    tgt = target.astype(jnp.int32)
    if need_mask:
        pred_p = jnp.pad(pred, ((0, n_pad - N), (0, 0)))
        tgt = jnp.pad(tgt, ((0, n_pad - N),))
    else:
        pred_p = pred
    tgt2d = tgt.reshape(n_pad, 1)

    kernel = functools.partial(
        _label_smoothing_kernel,
        classes=classes,
        smoothing=float(smoothing),
        n_valid=N,
        tile_n=tile_n,
        need_mask=need_mask,
    )

    row_losses = pl.pallas_call(
        kernel,
        out_shape=jax.ShapeDtypeStruct((n_pad, 1), jnp.float32),
        grid_spec=pltpu.PrefetchScalarGridSpec(
            num_scalar_prefetch=0,
            grid=(num_tiles,),
            in_specs=[
                pl.BlockSpec((tile_n, C), lambda i: (i, 0)),
                pl.BlockSpec((tile_n, 1), lambda i: (i, 0)),
            ],
            out_specs=pl.BlockSpec((tile_n, 1), lambda i: (i, 0)),
        ),
        compiler_params=pltpu.CompilerParams(
            # Each step writes its own output block -> no carried state -> parallel
            # (sharded across both TensorCores on v7x; no-op on v5e/v6e).
            dimension_semantics=("parallel",),
            vmem_limit_bytes=vmem_limit,
        ),
        cost_estimate=pl.CostEstimate(
            flops=8 * n_pad * C,
            transcendentals=n_pad * C + 2 * n_pad,
            bytes_accessed=n_pad * C * itemsize + n_pad * 4 + n_pad * 4,
        ),
    )(pred_p, tgt2d)

    # torch.mean over the batch dimension (class reduction already done in-kernel).
    return (jnp.sum(row_losses) / jnp.float32(N)).astype(jnp.float32)


def _reference(pred, target, classes, smoothing):
    """Pure-JAX reference mirroring the PyTorch module."""
    logp = jax.nn.log_softmax(pred.astype(jnp.float32), axis=-1)
    confidence = 1.0 - smoothing
    off = smoothing / (classes - 1)
    true_dist = jnp.full_like(logp, off)
    true_dist = true_dist.at[jnp.arange(pred.shape[0]), target].set(confidence)
    return jnp.mean(jnp.sum(-true_dist * logp, axis=-1))


if __name__ == "__main__":
    key = jax.random.PRNGKey(0)
    smoothing = 0.1

    # Two small cases: one that tiles evenly, one that exercises pad + mask.
    for (N, C) in [(16, 10), (13, 10)]:
        k1, k2 = jax.random.split(jax.random.fold_in(key, N))
        pred = jax.random.normal(k1, (N, C), dtype=jnp.float32)
        target = jax.random.randint(k2, (N,), 0, C, dtype=jnp.int32)

        out = label_smoothing_loss(pred, target, classes=C, smoothing=smoothing)
        out = jax.block_until_ready(out)

        ref = _reference(pred, target, C, smoothing)
        assert jnp.allclose(out, ref, atol=1e-5, rtol=1e-5), (N, C, out, ref)

    print("KERNEL_OK")
</pallas_src>

<mosaic_0001>
module attributes {stable_mosaic.version = 11 : i64} {
  func.func @_label_smoothing_kernel(%arg0: i32, %arg1: memref<16x10xf32, #tpu.memory_space<vmem>>, %arg2: memref<16x1xi32, #tpu.memory_space<vmem>>, %arg3: memref<16x1xf32, #tpu.memory_space<vmem>>) attributes {dimension_semantics = [#tpu.dimension_semantics<parallel>], iteration_bounds = array<i64: 1>, scalar_prefetch = 0 : i64, scratch_operands = 0 : i64, tpu.core_type = #tpu.core_type<tc>, window_params = [{transform_indices = @transform_0, window_bounds = array<i64: 16, 10>}, {transform_indices = @transform_1, window_bounds = array<i64: 16, 1>}, {transform_indices = @transform_2, window_bounds = array<i64: 16, 1>}]} {
    %c0 = arith.constant 0 : index
    %c0_0 = arith.constant 0 : index
    %0 = vector.load %arg1[%c0, %c0_0] : memref<16x10xf32, #tpu.memory_space<vmem>>, vector<16x10xf32>
    %c0_1 = arith.constant 0 : index
    %c0_2 = arith.constant 0 : index
    %1 = vector.load %arg2[%c0_1, %c0_2] : memref<16x1xi32, #tpu.memory_space<vmem>>, vector<16x1xi32>
    %cst = arith.constant dense<0xFF800000> : vector<16xf32>
    %2 = vector.multi_reduction <maximumf>, %0, %cst [1] : vector<16x10xf32> to vector<16xf32>
    %3 = vector.shape_cast %2 : vector<16xf32> to vector<16x1xf32>
    %4 = vector.broadcast %3 : vector<16x1xf32> to vector<16x10xf32>
    %5 = arith.subf %0, %4 : vector<16x10xf32>
    %6 = math.exp %5 : vector<16x10xf32>
    %cst_3 = arith.constant dense<0.000000e+00> : vector<16xf32>
    %7 = vector.multi_reduction <add>, %6, %cst_3 [1] : vector<16x10xf32> to vector<16xf32>
    %8 = vector.shape_cast %7 : vector<16xf32> to vector<16x1xf32>
    %9 = math.log %8 : vector<16x1xf32>
    %cst_4 = arith.constant dense<0.000000e+00> : vector<16xf32>
    %10 = vector.multi_reduction <add>, %5, %cst_4 [1] : vector<16x10xf32> to vector<16xf32>
    %11 = vector.shape_cast %10 : vector<16xf32> to vector<16x1xf32>
    %12 = tpu.iota {dimensions = array<i32: 1>} : vector<16x10xi32>
    %13 = vector.broadcast %1 : vector<16x1xi32> to vector<16x10xi32>
    %14 = arith.cmpi eq, %12, %13 : vector<16x10xi32>
    %cst_5 = arith.constant 0.000000e+00 : f32
    %15 = vector.broadcast %cst_5 : f32 to vector<16x10xf32>
    %16 = arith.select %14, %5, %15 : vector<16x10xi1>, vector<16x10xf32>
    %cst_6 = arith.constant dense<0.000000e+00> : vector<16xf32>
    %17 = vector.multi_reduction <add>, %16, %cst_6 [1] : vector<16x10xf32> to vector<16xf32>
    %18 = vector.shape_cast %17 : vector<16xf32> to vector<16x1xf32>
    %cst_7 = arith.constant 1.000000e+01 : f32
    %19 = vector.broadcast %cst_7 : f32 to vector<16x1xf32>
    %20 = arith.mulf %19, %9 : vector<16x1xf32>
    %21 = arith.subf %11, %20 : vector<16x1xf32>
    %cst_8 = arith.constant -0.0111111114 : f32
    %22 = vector.broadcast %cst_8 : f32 to vector<16x1xf32>
    %23 = arith.mulf %22, %21 : vector<16x1xf32>
    %24 = arith.subf %18, %9 : vector<16x1xf32>
    %cst_9 = arith.constant 0.888888895 : f32
    %25 = vector.broadcast %cst_9 : f32 to vector<16x1xf32>
    %26 = arith.mulf %25, %24 : vector<16x1xf32>
    %27 = arith.subf %23, %26 : vector<16x1xf32>
    %c0_10 = arith.constant 0 : index
    %c0_11 = arith.constant 0 : index
    %28 = vector.load %arg3[%c0_10, %c0_11] : memref<16x1xf32, #tpu.memory_space<vmem>>, vector<16x1xf32>
    tpu.vector_store %arg3[%c0_10, %c0_11], %27 {strides = array<i32>} : memref<16x1xf32, #tpu.memory_space<vmem>>, vector<16x1xf32>,
    return
  }
  func.func @transform_0(%arg0: i32) -> (i32, i32) {
    %c0_i32 = arith.constant 0 : i32
    %c0_i32_0 = arith.constant 0 : i32
    return %arg0, %c0_i32 : i32, i32
  }
  func.func @transform_1(%arg0: i32) -> (i32, i32) {
    %c0_i32 = arith.constant 0 : i32
    %c0_i32_0 = arith.constant 0 : i32
    return %arg0, %c0_i32 : i32, i32
  }
  func.func @transform_2(%arg0: i32) -> (i32, i32) {
    %c0_i32 = arith.constant 0 : i32
    %c0_i32_0 = arith.constant 0 : i32
    return %arg0, %c0_i32 : i32, i32
  }
}

</mosaic_0001>

<bundles_post_ra>
// kernel: tpu_custom_call.1
= control target key start
LH: loop header
LB: loop body
LE: loop exit
PB: predicated region body
PF: predicated region fallthrough
CT: control target
= control target key end

     0   :  { %vm15_vm0 = vcmask 80896   ;;  %v92_v2 = vmov 0   ;;  %v44_v13 = vlaneseq  ;;  %vm74_vm3 = vcmask 7168   ;;  %s134_s0 = inlined_call_operand.vmem [shape: f32[16,10], index: 0, kind: input, shape index: {}]   ;;  %s135_s1 = inlined_call_operand.vmem [shape: s32[16,1], index: 1, kind: input, shape index: {}]   ;;  %s136_s2 = inlined_call_operand.vmem [shape: f32[16,1], index: 2, kind: output, shape index: {}]  }
   0x1   :  { %v11_v0 = vld [vmem:[%s134_s0] sm:$0xff]  ;;  %v12_v1 = vld [vmem:[%s134_s0 + $0x8] sm:$0xff]  ;;  %82 = vset.pattern.permute.xlu1 %v92_v2  ;;  %83 = vset.pattern.permute.xlu0 %v92_v2 }
   0x2   :  { %v13_v3 = vld [vmem:[%s135_s1] sm:$0xff]  ;;  %v16_v4 = vsel %vm15_vm0, %v11_v0, -inf  ;;  %v14_v5 = vld [vmem:[%s135_s1 + $0x8] sm:$0xff]  ;;  %v19_v6 = vsel %vm15_vm0, %v12_v1, -inf  ;;  %v45_v17 = vand.u32 127, %v44_v13 }
   0x3   :  { %47 = vperm.xlu1 %82, %v13_v3   ;;  %17 = vmax.xlane.f32.xlu0 %v16_v4 }
   0x7   :  { %50 = vperm.xlu1 %82, %v14_v5   ;;  %20 = vmax.xlane.f32.xlu0 %v19_v6 }
  0x82   :  { %v48_v16 = vpop.permute.xlu1 %47 }
  0x83   :  { %vm52_vm1 = vcmp.eq.s32.totalorder %v45_v17, %v48_v16 }
  0x86   :  { %v51_v21 = vpop.permute.xlu1 %50 }
  0x87   :  { %vm53_vm2 = vcmp.eq.s32.totalorder %v45_v17, %v51_v21 }
  0x90   :  { %v18_v7 = vpop.xlane.xlu0 %17 }
  0x91   :  { %v22_v8 = vsub.f32 %v11_v0, %v18_v7 }
  0x93   :  { %v24_v9 = vmul.f32 1.442695, %v22_v8  ;;  %v38_v19 = vsel %vm15_vm0, %v22_v8, 0.0  ;;  %v54_v23 = vsel %vm52_vm1, %v22_v8, 0.0 }
  0x94   :  { %v21_v10 = vpop.xlane.xlu0 %20  ;;  %v56_v24 = vsel %vm15_vm0, %v54_v23, 0.0 }
  0x95   :  { %84 = vpow2.f32 %v24_v9  ;;  %v23_v11 = vsub.f32 %v12_v1, %v21_v10 }
  0x97   :  { %v26_v12 = vmul.f32 1.442695, %v23_v11  ;;  %v41_v22 = vsel %vm15_vm0, %v23_v11, 0.0  ;;  %v55_v25 = vsel %vm53_vm2, %v23_v11, 0.0 }
  0x98   :  { %v59_v26 = vsel %vm15_vm0, %v55_v25, 0.0 }
  0x99   :  { %86 = vpow2.f32 %v26_v12 }
  0x9f   :  { %v85_v14 = vpop.eup %84 }
  0xa0   :  { %v28_v15 = vsel %vm15_vm0, %v85_v14, 0.0 }
  0xa1   :  { %29 = vadd.xlane.f32.xlu0 %v28_v15 }
  0xa3   :  { %v87_v18 = vpop.eup %86 }
  0xa4   :  { %v31_v20 = vsel %vm15_vm0, %v87_v18, 0.0 }
  0xa5   :  { %39 = vadd.xlane.f32.xlu0 %v38_v19  ;;  %32 = vadd.xlane.f32.xlu1 %v31_v20 }
  0xa9   :  { %42 = vadd.xlane.f32.xlu0 %v41_v22 }
  0xad   :  { %57 = vadd.xlane.f32.xlu0 %v56_v24 }
  0xb1   :  { %60 = vadd.xlane.f32.xlu0 %v59_v26 }
 0x12e   :  { %v30_v27 = vpop.xlane.xlu0 %29 }
 0x12f   :  { %88 = vlog2.f32 %v30_v27 }
 0x132   :  { %v33_v28 = vpop.xlane.xlu1 %32  ;;  %v40_v29 = vpop.xlane.xlu0 %39 }
 0x133   :  { %90 = vlog2.f32 %v33_v28 }
 0x136   :  { %v43_v30 = vpop.xlane.xlu0 %42 }
 0x139   :  { %v89_v31 = vpop.eup %88 }
 0x13a   :  { %v35_v32 = vmul.f32 0.6931472, %v89_v31  ;;  %v58_v33 = vpop.xlane.xlu0 %57 }
 0x13c   :  { %v62_v34 = vmul.f32 10.0, %v35_v32  ;;  %v68_v35 = vsub.f32 %v58_v33, %v35_v32 }
 0x13d   :  { %v91_v36 = vpop.eup %90 }
 0x13e   :  { %v37_v37 = vmul.f32 0.6931472, %v91_v36  ;;  %v64_v38 = vsub.f32 %v40_v29, %v62_v34  ;;  %v61_v39 = vpop.xlane.xlu0 %60  ;;  %v70_v42 = vmul.f32 0.8888889, %v68_v35 }
 0x140   :  { %v66_v40 = vmul.f32 -0.011111111, %v64_v38  ;;  %v63_v41 = vmul.f32 10.0, %v37_v37  ;;  %v69_v43 = vsub.f32 %v61_v39, %v37_v37 }
 0x142   :  { %v65_v44 = vsub.f32 %v43_v30, %v63_v41  ;;  %v72_v45 = vsub.f32 %v66_v40, %v70_v42  ;;  %v71_v47 = vmul.f32 0.8888889, %v69_v43 }
 0x144   :  { %v67_v46 = vmul.f32 -0.011111111, %v65_v44  ;;  %75 = vst.msk [vmem:[%s136_s2] sm:$0xff] %vm74_vm3, %v72_v45 }
 0x146   :  { %v73_v48 = vsub.f32 %v67_v46, %v71_v47 }
 0x148   :  { %76 = vst.msk [vmem:[%s136_s2 + $0x8] sm:$0xff] %vm74_vm3, %v73_v48 }

</bundles_post_ra>
